<compile_context>
chip_gen: v7x
topology: tpu7x:2x2x1
jax: 0.10.0
libtpu: 0.0.40
codegen_flags: <defaults>
</compile_context>

<pallas_src>
import functools

import jax
import jax.numpy as jnp
from jax.experimental import pallas as pl
from jax.experimental.pallas import tpu as pltpu


def _round_up(a, b):
    return (a + b - 1) // b * b


def _clustering_kernel(x_ref, ct_ref, csq_ref, o_ref, *, alpha, k):
    # x_ref:   (block_n, H)   tile of the batch
    # ct_ref:  (H, Kp)        -2 * centers^T, K-padded with zeros (resident)
    # csq_ref: (1, Kp)        per-cluster squared norms, K-padded with +inf
    # o_ref:   (block_n, K)   output tile (narrow store, no K padding in HBM)
    x = x_ref[...].astype(jnp.float32)                       # (bn, H)
    ct = ct_ref[...]                                         # (H, Kp)

    # ||x - c||^2 = ||x||^2 + ||c||^2 - 2 x.c   (cross term on the MXU; the
    # -2 is folded into ct). Padded columns: csq = +inf -> norm = +inf.
    x_sq = jnp.sum(x * x, axis=1, keepdims=True)             # (bn, 1)
    cross = jnp.dot(x, ct, preferred_element_type=jnp.float32)  # (bn, Kp)
    norm_squared = jnp.maximum(x_sq + csq_ref[...] + cross, 0.0)

    power = (alpha + 1.0) / 2.0
    base = 1.0 + norm_squared * (1.0 / alpha)                # +inf in pad cols
    if power == 1.0:
        # alpha == 1 (DEC default): exact divide; padded columns -> 1/inf = 0.
        numerator = 1.0 / base
    else:
        # single exp/log instead of a generic pow; exp(-inf) = 0 for pad cols.
        numerator = jnp.exp(-power * jnp.log(base))

    # Padded columns contribute exactly 0, so the sum is over valid clusters.
    denom = jnp.sum(numerator, axis=1, keepdims=True)        # (bn, 1)
    inv_denom = 1.0 / denom                                  # exact: rows sum to 1
    o_ref[...] = (numerator[:, :k] * inv_denom).astype(o_ref.dtype)


def clustering_layer(x, cluster_centers, alpha=1.0, *, block_n=None):
    """x: (N, H) float32, cluster_centers: (K, H) float32 -> (N, K) float32."""
    n, h = x.shape
    k, h2 = cluster_centers.shape
    assert h == h2, "hidden dim mismatch"

    # Lane-dense K for the in-vreg compute (centers / intermediates only;
    # the HBM output stays (N, K)).
    k_pad = _round_up(k, 128)

    # VMEM budget: double-buffered x tile + output tile, double-buffered
    # resident centers + ||c||^2, and ~4 live (block_n, Kp) f32 temporaries.
    per_row = 2 * h * 4 + 2 * k * 4 + 4 * k_pad * 4
    fixed = 2 * (h * k_pad * 4) + 2 * (k_pad * 4)
    if block_n is None:
        budget = 12 * 1024 * 1024          # fits v5e's 16 MiB scoped default
        block_n = (max(budget - fixed, per_row) // per_row) // 8 * 8
        block_n = max(8, min(block_n, 2048))
        # Keep >= 2 grid steps when N allows (v7x has 2 TensorCores) and never
        # exceed the (8-rounded) batch.
        half = max(8, _round_up(pl.cdiv(n, 2), 8))
        block_n = min(block_n, half, _round_up(n, 8))
    assert block_n % 8 == 0, "block_n must be a multiple of 8"

    num_tiles = pl.cdiv(n, block_n)        # ragged N handled by Pallas masking
    vmem_limit = max(32 * 1024 * 1024, int(1.5 * (fixed + block_n * per_row)))

    # Precompute (once, outside the grid): -2 * centers^T (zero-padded) and
    # per-cluster squared norms (+inf-padded so pad columns vanish in-kernel).
    c = cluster_centers.astype(jnp.float32)
    ct = jnp.pad(-2.0 * c.T, ((0, 0), (0, k_pad - k)))                  # (H, Kp)
    csq = jnp.pad(jnp.sum(c * c, axis=1), (0, k_pad - k),
                  constant_values=jnp.inf)[None, :]                     # (1, Kp)

    kernel = functools.partial(_clustering_kernel, alpha=float(alpha), k=k)

    return pl.pallas_call(
        kernel,
        out_shape=jax.ShapeDtypeStruct((n, k), jnp.float32),
        grid=(num_tiles,),
        in_specs=[
            pl.BlockSpec((block_n, h), lambda i: (i, 0)),   # x tile
            pl.BlockSpec((h, k_pad), lambda i: (0, 0)),     # -2*centers^T (resident)
            pl.BlockSpec((1, k_pad), lambda i: (0, 0)),     # ||c||^2      (resident)
        ],
        out_specs=pl.BlockSpec((block_n, k), lambda i: (i, 0)),
        compiler_params=pltpu.CompilerParams(
            dimension_semantics=("parallel",),
            vmem_limit_bytes=vmem_limit),
    )(x, ct, csq)


def _reference(x, c, alpha=1.0):
    norm_squared = jnp.sum((x[:, None, :] - c[None, :, :]) ** 2, axis=2)
    numerator = 1.0 / (1.0 + norm_squared / alpha)
    power = (alpha + 1.0) / 2.0
    numerator = numerator ** power
    return numerator / jnp.sum(numerator, axis=1, keepdims=True)


if __name__ == "__main__":
    n_clusters = 10
    hidden = 32
    batch = 8

    key = jax.random.PRNGKey(0)
    kx, kc = jax.random.split(key)

    # Deterministic xavier_uniform_-style init for the cluster centers (K, H):
    # bound = sqrt(6 / (fan_in + fan_out)) = sqrt(6 / (H + K))
    bound = (6.0 / (hidden + n_clusters)) ** 0.5
    cluster_centers = jax.random.uniform(
        kc, (n_clusters, hidden), dtype=jnp.float32, minval=-bound, maxval=bound)

    x = jax.random.normal(kx, (batch, hidden), dtype=jnp.float32)

    # alpha = 1.0 (DEC default, pow-free fast path)
    out = jax.block_until_ready(clustering_layer(x, cluster_centers, alpha=1.0))
    ref = _reference(x, cluster_centers, alpha=1.0)
    assert out.shape == (batch, n_clusters)
    assert jnp.allclose(out, ref, atol=1e-3, rtol=1e-3), "mismatch vs reference (alpha=1)"
    assert jnp.allclose(jnp.sum(out, axis=1), 1.0, atol=1e-3)

    # General alpha + ragged batch (exercises the partial last tile and the
    # exp/log path).
    x2 = jax.random.normal(jax.random.PRNGKey(1), (13, hidden), dtype=jnp.float32)
    out2 = jax.block_until_ready(clustering_layer(x2, cluster_centers, alpha=2.0))
    ref2 = _reference(x2, cluster_centers, alpha=2.0)
    assert out2.shape == (13, n_clusters)
    assert jnp.allclose(out2, ref2, atol=1e-3, rtol=1e-3), "mismatch vs reference (alpha=2)"
    assert jnp.allclose(jnp.sum(out2, axis=1), 1.0, atol=1e-3)

    print("KERNEL_OK")
</pallas_src>

<mosaic_0001>
module attributes {stable_mosaic.version = 11 : i64} {
  func.func @_clustering_kernel(%arg0: i32, %arg1: memref<8x32xf32, #tpu.memory_space<vmem>>, %arg2: memref<32x128xf32, #tpu.memory_space<vmem>>, %arg3: memref<1x128xf32, #tpu.memory_space<vmem>>, %arg4: memref<8x10xf32, #tpu.memory_space<vmem>>) attributes {dimension_semantics = [#tpu.dimension_semantics<parallel>], iteration_bounds = array<i64: 1>, scalar_prefetch = 0 : i64, scratch_operands = 0 : i64, tpu.core_type = #tpu.core_type<tc>, window_params = [{transform_indices = @transform_0, window_bounds = array<i64: 8, 32>}, {pipeline_mode = #tpu.pipeline_mode<synchronous>, transform_indices = @transform_1, window_bounds = array<i64: 32, 128>}, {pipeline_mode = #tpu.pipeline_mode<synchronous>, transform_indices = @transform_2, window_bounds = array<i64: 1, 128>}, {transform_indices = @transform_3, window_bounds = array<i64: 8, 10>}]} {
    %c0 = arith.constant 0 : index
    %c0_0 = arith.constant 0 : index
    %0 = vector.load %arg1[%c0, %c0_0] : memref<8x32xf32, #tpu.memory_space<vmem>>, vector<8x32xf32>
    %c0_1 = arith.constant 0 : index
    %c0_2 = arith.constant 0 : index
    %1 = vector.load %arg2[%c0_1, %c0_2] : memref<32x128xf32, #tpu.memory_space<vmem>>, vector<32x128xf32>
    %2 = arith.mulf %0, %0 : vector<8x32xf32>
    %cst = arith.constant dense<0.000000e+00> : vector<8xf32>
    %3 = vector.multi_reduction <add>, %2, %cst [1] : vector<8x32xf32> to vector<8xf32>
    %4 = vector.shape_cast %3 : vector<8xf32> to vector<8x1xf32>
    %cst_3 = arith.constant dense<0.000000e+00> : vector<8x128xf32>
    %5 = tpu.matmul %0, %1, %cst_3 {dimension_numbers = #tpu.dot_dimension_numbers<[1], [0], [0], [1], [0, 0, 1, 1], [], []>} : vector<8x32xf32>, vector<32x128xf32>, vector<8x128xf32> -> vector<8x128xf32>
    %c0_4 = arith.constant 0 : index
    %c0_5 = arith.constant 0 : index
    %6 = vector.load %arg3[%c0_4, %c0_5] : memref<1x128xf32, #tpu.memory_space<vmem>>, vector<1x128xf32>
    %7 = vector.broadcast %4 : vector<8x1xf32> to vector<8x128xf32>
    %8 = vector.broadcast %6 : vector<1x128xf32> to vector<8x128xf32>
    %9 = arith.addf %7, %8 : vector<8x128xf32>
    %10 = arith.addf %9, %5 : vector<8x128xf32>
    %cst_6 = arith.constant 0.000000e+00 : f32
    %11 = vector.broadcast %cst_6 : f32 to vector<8x128xf32>
    %12 = arith.maximumf %10, %11 : vector<8x128xf32>
    %cst_7 = arith.constant 1.000000e+00 : f32
    %13 = vector.broadcast %cst_7 : f32 to vector<8x128xf32>
    %14 = arith.mulf %12, %13 : vector<8x128xf32>
    %cst_8 = arith.constant 1.000000e+00 : f32
    %15 = vector.broadcast %cst_8 : f32 to vector<8x128xf32>
    %16 = arith.addf %15, %14 : vector<8x128xf32>
    %cst_9 = arith.constant 1.000000e+00 : f32
    %17 = vector.broadcast %cst_9 : f32 to vector<8x128xf32>
    %18 = arith.divf %17, %16 : vector<8x128xf32>
    %cst_10 = arith.constant dense<0.000000e+00> : vector<8xf32>
    %19 = vector.multi_reduction <add>, %18, %cst_10 [1] : vector<8x128xf32> to vector<8xf32>
    %20 = vector.shape_cast %19 : vector<8xf32> to vector<8x1xf32>
    %cst_11 = arith.constant 1.000000e+00 : f32
    %21 = vector.broadcast %cst_11 : f32 to vector<8x1xf32>
    %22 = arith.divf %21, %20 : vector<8x1xf32>
    %23 = vector.extract_strided_slice %18 {offsets = [0, 0], sizes = [8, 10], strides = [1, 1]} : vector<8x128xf32> to vector<8x10xf32>
    %24 = vector.broadcast %22 : vector<8x1xf32> to vector<8x10xf32>
    %25 = arith.mulf %23, %24 : vector<8x10xf32>
    %c0_12 = arith.constant 0 : index
    %c0_13 = arith.constant 0 : index
    %26 = vector.load %arg4[%c0_12, %c0_13] : memref<8x10xf32, #tpu.memory_space<vmem>>, vector<8x10xf32>
    tpu.vector_store %arg4[%c0_12, %c0_13], %25 {strides = array<i32>} : memref<8x10xf32, #tpu.memory_space<vmem>>, vector<8x10xf32>,
    return
  }
  func.func @transform_0(%arg0: i32) -> (i32, i32) {
    %c0_i32 = arith.constant 0 : i32
    %c0_i32_0 = arith.constant 0 : i32
    return %arg0, %c0_i32 : i32, i32
  }
  func.func @transform_1(%arg0: i32) -> (i32, i32) {
    %c0_i32 = arith.constant 0 : i32
    %c0_i32_0 = arith.constant 0 : i32
    %c0_i32_1 = arith.constant 0 : i32
    return %c0_i32, %c0_i32_0 : i32, i32
  }
  func.func @transform_2(%arg0: i32) -> (i32, i32) {
    %c0_i32 = arith.constant 0 : i32
    %c0_i32_0 = arith.constant 0 : i32
    %c0_i32_1 = arith.constant 0 : i32
    return %c0_i32, %c0_i32_0 : i32, i32
  }
  func.func @transform_3(%arg0: i32) -> (i32, i32) {
    %c0_i32 = arith.constant 0 : i32
    %c0_i32_0 = arith.constant 0 : i32
    return %arg0, %c0_i32 : i32, i32
  }
}

</mosaic_0001>

<bundles_post_ra>
// kernel: tpu_custom_call.1
= control target key start
LH: loop header
LB: loop body
LE: loop exit
PB: predicated region body
PF: predicated region fallthrough
CT: control target
= control target key end

     0   :  { %8 = vsyncpa [#allocation3], 0  ;;  %s342_s0 = inlined_call_operand.hbm [shape: f32[8,32], index: 0, kind: input, shape index: {}]   ;;  %s343_s1 = inlined_call_operand.hbm [shape: f32[32,128], index: 1, kind: input, shape index: {}]   ;;  %s344_s2 = inlined_call_operand.vmem [shape: f32[1,128], index: 2, kind: input, shape index: {}]   ;;  %s345_s3 = inlined_call_operand.hbm [shape: f32[8,10], index: 3, kind: output, shape index: {}]  }
   0x1   :  { %9 = vsyncpa [#allocation6], 0 }
   0x2   :  { %10 = vsyncpa [#allocation4], 0  ;;  %s268_s12 = smov [#allocation2]   ;;  %s269_s14 = smov [#allocation5]  }
   0x3   :  { %s17_s13 = sshll.u32 %s268_s12, 4  ;;  %s26_s15 = sshll.u32 %s269_s14, 4  ;;  %s18_s13 = int_to_ptr.vmem [resolvable:$true] %s17_s13  ;;  %s296_s15 = int_to_ptr.vmem [resolvable:$true] %s26_s15 }
   0x4   :  { %s196_s18 = scalar_lea.hbm %s342_s0, 128 }
   0x5   :  { %p197_p0 = scmp.ne.s32.totalorder %s342_s0, %s196_s18  ;;  %p200_p1 = scmp.lt.u32.totalorder %s196_s18, %s342_s0 }
   0x7   :  { %p202_p2 = pnand %p200_p1, %p197_p0 }
   0x9   :  { %205 = shalt.err (!%p202_p2)
}
   0xa   :  { %s206_s23 = scalar_lea.vmem %s18_s13, 128  ;;  %p211_p4 = scmp.lt.s32.totalorder %s18_s13, %s18_s13 }
   0xb   :  { %p207_p3 = scmp.ne.s32.totalorder %s18_s13, %s206_s23  ;;  %p212_p5 = scmp.lt.s32.totalorder %s206_s23, %s206_s23 }
   0xd   :  { %p213_p6 = por %p212_p5, %p211_p4 }
   0xf   :  { %p214_p7 = pnand %p213_p6, %p207_p3 }
  0x11   :  { %217 = shalt.err (!%p214_p7)
}
  0x12   :  { %20 = dma.hbm_to_vmem [thread:$0]  %s342_s0, 128, %s18_s13, [#allocation3]  }
  0x13   :  { %s218_s28 = scalar_lea.hbm %s343_s1, 512 }
  0x14   :  { %p219_p8 = scmp.ne.s32.totalorder %s343_s1, %s218_s28  ;;  %p222_p9 = scmp.lt.u32.totalorder %s218_s28, %s343_s1 }
  0x16   :  { %p224_p10 = pnand %p222_p9, %p219_p8 }
  0x18   :  { %227 = shalt.err (!%p224_p10)
}
  0x19   :  { %s228_s6 = scalar_lea.vmem %s296_s15, 512  ;;  %p233_p12 = scmp.lt.s32.totalorder %s296_s15, %s296_s15 }
  0x1a   :  { %p229_p11 = scmp.ne.s32.totalorder %s296_s15, %s228_s6  ;;  %p234_p13 = scmp.lt.s32.totalorder %s228_s6, %s228_s6 }
  0x1c   :  { %p235_p0 = por %p234_p13, %p233_p12 }
  0x1e   :  { %p236_p1 = pnand %p235_p0, %p229_p11 }
  0x20   :  { %239 = shalt.err (!%p236_p1)
}
  0x21   :  { %s270_s0 = smov 128   ;;  %s271_s7 = smov 8  }
  0x22   :  { %32 = dma.hbm_to_vmem [thread:$0]  %s343_s1, 512, %s296_s15, [#allocation6], %s270_s0, %s270_s0, %s271_s7  }
  0x23   :  { %262 = dma.done.wait [#allocation3], 128  }
  0x24   :  { %263 = vsyncadd [#allocation3], 4294967168 }
  0x25   :  { %264 = dma.done.wait [#allocation6], 512  }
  0x26   :  { %265 = vsyncadd [#allocation6], 4294966784  ;;  %v272_v0 = vmov 0.0|0.0   ;;  %vm273_vm0 = vmmov 0   ;;  %v274_v1 = vmov 0.0   ;;  %v42_v2 = vld [vmem:[#allocation5] sm:$0xff] }
  0x27   :  { %178 = vmatprep.subr.bf16.mxu0 %v272_v0  ;;  %175 = vmatprep.mubr.msk.f32.mxu0 %vm273_vm0, %v274_v1  ;;  %v43_v3 = vld [vmem:[#allocation5 + $0x8] sm:$0xff]  ;;  %v44_v4 = vld [vmem:[#allocation5 + $0x10] sm:$0xff]  ;;  %v45_v6 = vld [vmem:[#allocation5 + $0x18] sm:$0xff]  ;;  %vm47_vm1 = vcmask 261120   ;;  %s275_s11 = smov [#allocation7]   ;;  %vm142_vm2 = vcmask 80896  }
  0x28   :  { %v179_v5 = vpack.c.bf16 %v43_v3, %v42_v2  ;;  %v41_v7 = vld [vmem:[#allocation2] sm:$0xff]  ;;  %v182_v9 = vpack.c.bf16 %v45_v6, %v44_v4  ;;  %s150_s12 = sshll.u32 %s275_s11, 4  ;;  %s151_s12 = int_to_ptr.vmem [resolvable:$true] %s150_s12 }
  0x29   :  { %v46_v8 = vmul.f32 %v41_v7, %v41_v7  ;;  %v161_v11 = vld [vmem:[%s344_s2] ss:$0 sm:$0xff]  ;;  %s240_s2 = scalar_lea.vmem %s151_s12, 128  ;;  %p245_p3 = scmp.lt.s32.totalorder %s151_s12, %s151_s12 }
  0x2a   :  { %180 = vmatpush3.bf16.msra.mxu0 %v179_v5  ;;  %p241_p2 = scmp.ne.s32.totalorder %s151_s12, %s240_s2  ;;  %p246_p4 = scmp.lt.s32.totalorder %s240_s2, %s240_s2 }
  0x2b   :  { %181 = vmatprep.subr.bf16.mxu0 %v272_v0  ;;  %v48_v10 = vsel %vm47_vm1, %v46_v8, 0.0 }
  0x2c   :  { %49 = vadd.xlane.f32.xlu0 %v48_v10  ;;  %p247_p5 = por %p246_p4, %p245_p3 }
  0x2e   :  { %183 = vmatpush3.bf16.msra.mxu0 %v182_v9  ;;  %p248_p6 = pnand %p247_p5, %p241_p2 }
  0x31   :  { %176 = vmatmul.mubr.msk.f32.vlgmr.msra.gmra.mrb[0].mxu0 %vm47_vm1, %v41_v7 }
  0xb9   :  { %v50_v12 = vpop.xlane.xlu0 %49 }
  0xba   :  { %v131_v13 = vadd.f32 %v161_v11, %v50_v12 }
 0x104   :  { %v120_v14 = vpop.f32.mrb[0].mxu0 }
 0x105   :  { %v132_v15 = vadd.f32 %v131_v13, %v120_v14  ;;  %v177_v16 = vpop.f32.mrb[1].mxu0 }
 0x107   :  { %v133_v17 = vmax.f32 %v132_v15, 0.0 }
 0x109   :  { %v134_v18 = vadd.f32 1.0, %v133_v17 }
 0x10b   :  { %192 = vrcp.f32 %v134_v18 }
 0x115   :  { %v193_v19 = vpop.eup %192 }
 0x116   :  { %137 = vadd.xlane.f32.xlu0 %v193_v19 }
 0x1a3   :  { %v138_v20 = vpop.xlane.xlu0 %137 }
 0x1a4   :  { %194 = vrcp.f32 %v138_v20 }
 0x1ae   :  { %v195_v21 = vpop.eup %194 }
 0x1af   :  { %v141_v22 = vmul.f32 %v195_v21, %v193_v19 }
 0x1b1   :  { %143 = vst.msk [vmem:[#allocation7] sm:$0xff] %vm142_vm2, %v141_v22 }
 0x1b2   :  { %251 = shalt.err (!%p248_p6)
}
 0x1b3   :  { %s252_s15 = scalar_lea.hbm %s345_s3, 128 }
 0x1b4   :  { %p253_p7 = scmp.ne.s32.totalorder %s345_s3, %s252_s15  ;;  %p256_p8 = scmp.lt.u32.totalorder %s252_s15, %s345_s3 }
 0x1b6   :  { %p258_p9 = pnand %p256_p8, %p253_p7 }
 0x1b8   :  { %261 = shalt.err (!%p258_p9)
}
 0x1b9   :  { %153 = dma.vmem_to_hbm [thread:$0]  %s151_s12, 128, %s345_s3, [#allocation4]  }
 0x1ba   :  { %266 = dma.done.wait [#allocation4], 128  }
 0x1bb   :  { %267 = vsyncadd [#allocation4], 4294967168 }
 0x1bc   :  { %157 = vsyncpa [#allocation3], 1 }
 0x1bd   :  { %158 = vsyncpa [#allocation6], 1 }
 0x1be   :  { %159 = vsyncpa [#allocation4], 1 }

</bundles_post_ra>
